<compile_context>
chip_gen: v6e
topology: v6e:2x2x1
jax: 0.10.0
libtpu: 0.0.40
codegen_flags: <defaults>
</compile_context>

<pallas_src>
import functools

import jax
import jax.numpy as jnp
from jax.experimental import pallas as pl
from jax.experimental.pallas import tpu as pltpu


def _reduce_mlp_kernel(x_ref, w1_ref, w2_ref, s_ref, *, inv_hw):
    """Pass 1: accumulate f32 channel sums; the last step runs the squeeze MLP.

    x_ref : (B, tr, CD)  spatial tile of the lane-dense input
    w1_ref: (CD, Cr)     fc1 weight, pre-tiled to the dense lane layout (resident)
    w2_ref: (Cr, CD)     fc2 weight, pre-tiled to the dense lane layout (resident)
    s_ref : (B, CD) f32  resident output block: channel-sum accumulator that is
                         overwritten with the sigmoid gates in the last step
    """
    t = pl.program_id(0)

    @pl.when(t == 0)
    def _init():
        s_ref[...] = jnp.zeros_like(s_ref)

    # Partial channel sums for this spatial tile (accumulate in f32).
    s_ref[...] += jnp.sum(x_ref[...].astype(jnp.float32), axis=1)

    # Epilogue: the whole squeeze-excite MLP runs exactly once per call, so it
    # never sits on the per-step critical path of the (mem-bound) gating pass.
    @pl.when(t == pl.num_programs(0) - 1)
    def _mlp():
        y = s_ref[...] * inv_hw                                    # (B, CD) mean
        h = jnp.maximum(
            jnp.dot(y, w1_ref[...].astype(jnp.float32),
                    preferred_element_type=jnp.float32), 0.0)      # (B, Cr)
        g = jax.nn.sigmoid(
            jnp.dot(h, w2_ref[...].astype(jnp.float32),
                    preferred_element_type=jnp.float32))           # (B, CD)
        s_ref[...] = g


def _apply_gate_kernel(s_ref, x_ref, o_ref):
    """Pass 2: lane-dense elementwise gating, grid = (batch, spatial tiles).

    s_ref: (B, CD) f32   all gates, resident (constant index_map)
    x_ref: (1, tg, CD)   spatial tile of batch element b
    o_ref: (1, tg, CD)
    """
    b = pl.program_id(0)
    gate = s_ref[pl.ds(b, 1), :].astype(o_ref.dtype)   # (1, CD)
    # Multiply in the input dtype (bf16 stays bf16 on v6e/v7x VPUs).
    o_ref[...] = x_ref[...] * gate


def _divisors(n):
    out = set()
    d = 1
    while d * d <= n:
        if n % d == 0:
            out.add(d)
            out.add(n // d)
        d += 1
    return sorted(out)


def _pick_rows(n_rows, bytes_per_row, *, total_steps_mult, min_steps,
               target_bytes=2 << 20):
    """Tile height: a divisor of n_rows that is a multiple of 8 sublanes (or the
    full extent), keeps one block under ~target_bytes, and — when the tensor is
    small — leaves enough grid steps for pipelining / megacore sharding."""
    cands = [c for c in _divisors(n_rows) if c % 8 == 0 or c == n_rows]
    cap = max(8, target_bytes // max(bytes_per_row, 1))
    fitting = [c for c in cands if c <= cap]
    rows = max(fitting) if fitting else min(cands)
    while total_steps_mult * (n_rows // rows) < min_steps:
        smaller = [c for c in cands if c < rows]
        if not smaller:
            break
        rows = max(smaller)
    return rows


def channel_aware_self_attention(x, w1, w2):
    """x: (B, H, W, C); w1: (C, C//r); w2: (C//r, C) -> (B, H, W, C)."""
    B, H, W, C = x.shape
    HW = H * W
    Cr = w1.shape[1]
    itemsize = jnp.dtype(x.dtype).itemsize

    # Lane-densify: fold k spatial positions into the lane axis so the last dim
    # is a multiple of 128 (unmasked, full-width vector loads/stores).
    if C < 128 and 128 % C == 0 and HW % (128 // C) == 0:
        k = 128 // C
    else:
        k = 1  # C is already lane-friendly (or not cleanly foldable)
    CD, HWD = k * C, HW // k
    x_dense = x.reshape(B, HWD, CD)

    # The dense layout puts k spatial positions side by side along lanes and the
    # gate is purely per-channel, so fold/tile the *tiny* MLP weights instead of
    # shuffling activations in-kernel:
    #   sum_i y[:, i*C:(i+1)*C] @ W1  ==  y @ tile(W1, (k, 1))
    #   tile(sigmoid(h @ W2), k)      ==  sigmoid(h @ tile(W2, (1, k)))
    w1d = jnp.tile(w1, (k, 1)) if k > 1 else w1            # (CD, Cr)
    w2d = jnp.tile(w2, (1, k)) if k > 1 else w2            # (Cr, CD)

    # ---- pass 1: channel sums + squeeze MLP -> gates s (B, CD), f32 ----
    tr = _pick_rows(HWD, B * CD * itemsize, total_steps_mult=1, min_steps=2)
    gates = pl.pallas_call(
        functools.partial(_reduce_mlp_kernel, inv_hw=1.0 / HW),
        out_shape=jax.ShapeDtypeStruct((B, CD), jnp.float32),
        grid_spec=pltpu.PrefetchScalarGridSpec(
            num_scalar_prefetch=0,
            grid=(HWD // tr,),
            in_specs=[
                pl.BlockSpec((B, tr, CD), lambda t: (0, t, 0)),
                pl.BlockSpec((CD, Cr), lambda t: (0, 0)),   # resident weights
                pl.BlockSpec((Cr, CD), lambda t: (0, 0)),   # resident weights
            ],
            out_specs=pl.BlockSpec((B, CD), lambda t: (0, 0)),  # accumulator
        ),
        compiler_params=pltpu.CompilerParams(
            dimension_semantics=("arbitrary",)),
    )(x_dense, w1d, w2d)

    # ---- pass 2: lane-dense gating, tiled over (batch, spatial) ----
    tg = _pick_rows(HWD, CD * itemsize, total_steps_mult=B, min_steps=8)
    out = pl.pallas_call(
        _apply_gate_kernel,
        out_shape=jax.ShapeDtypeStruct((B, HWD, CD), x.dtype),
        grid_spec=pltpu.PrefetchScalarGridSpec(
            num_scalar_prefetch=0,
            grid=(B, HWD // tg),
            in_specs=[
                pl.BlockSpec((B, CD), lambda b, t: (0, 0)),       # gates, resident
                pl.BlockSpec((1, tg, CD), lambda b, t: (b, t, 0)),
            ],
            out_specs=pl.BlockSpec((1, tg, CD), lambda b, t: (b, t, 0)),
        ),
        compiler_params=pltpu.CompilerParams(
            dimension_semantics=("parallel", "parallel")),
    )(gates, x_dense)

    return out.reshape(B, H, W, C)


def _reference(x, w1, w2):
    y = jnp.mean(x.astype(jnp.float32), axis=(1, 2))          # (B, C)
    h = jnp.maximum(y @ w1.astype(jnp.float32), 0.0)          # (B, C/r)
    s = jax.nn.sigmoid(h @ w2.astype(jnp.float32))            # (B, C)
    return (x.astype(jnp.float32) * s[:, None, None, :]).astype(x.dtype)


if __name__ == "__main__":
    B, H, W, C = 2, 16, 16, 64
    reduction = 16
    Cr = C // reduction

    key = jax.random.PRNGKey(0)
    kx, k1, k2 = jax.random.split(key, 3)

    x = jax.random.normal(kx, (B, H, W, C), dtype=jnp.float32)
    # nn.Linear(..., bias=False); PyTorch Linear weight is (out, in) — stored
    # transposed (in, out) here for right-multiplication.
    w1 = jax.random.uniform(k1, (C, Cr), jnp.float32,
                            minval=-(1.0 / C) ** 0.5, maxval=(1.0 / C) ** 0.5)
    w2 = jax.random.uniform(k2, (Cr, C), jnp.float32,
                            minval=-(1.0 / Cr) ** 0.5, maxval=(1.0 / Cr) ** 0.5)

    out = channel_aware_self_attention(x, w1, w2)
    out = jax.block_until_ready(out)

    ref = _reference(x, w1, w2)
    assert out.shape == (B, H, W, C)
    assert jnp.allclose(out, ref, atol=1e-5, rtol=1e-5), "mismatch vs JAX reference"

    print("KERNEL_OK")
</pallas_src>

<mosaic_0001>
module attributes {stable_mosaic.version = 11 : i64} {
  func.func @_reduce_mlp_kernel(%arg0: i32, %arg1: memref<2x64x128xf32, #tpu.memory_space<vmem>>, %arg2: memref<128x4xf32, #tpu.memory_space<vmem>>, %arg3: memref<4x128xf32, #tpu.memory_space<vmem>>, %arg4: memref<2x128xf32, #tpu.memory_space<vmem>>) attributes {dimension_semantics = [#tpu.dimension_semantics<arbitrary>], iteration_bounds = array<i64: 2>, scalar_prefetch = 0 : i64, scratch_operands = 0 : i64, tpu.core_type = #tpu.core_type<tc>, window_params = [{transform_indices = @transform_0, window_bounds = array<i64: 2, 64, 128>}, {pipeline_mode = #tpu.pipeline_mode<synchronous>, transform_indices = @transform_1, window_bounds = array<i64: 128, 4>}, {pipeline_mode = #tpu.pipeline_mode<synchronous>, transform_indices = @transform_2, window_bounds = array<i64: 4, 128>}, {pipeline_mode = #tpu.pipeline_mode<synchronous>, transform_indices = @transform_3, window_bounds = array<i64: 2, 128>}]} {
    %c0_i32 = arith.constant 0 : i32
    %0 = arith.cmpi eq, %arg0, %c0_i32 : i32
    %1 = arith.extui %0 : i1 to i32
    %c0_i32_0 = arith.constant 0 : i32
    %2 = arith.cmpi ne, %1, %c0_i32_0 : i32
    scf.if %2 {
      %cst_8 = arith.constant 0.000000e+00 : f32
      %11 = vector.broadcast %cst_8 : f32 to vector<2x128xf32>
      %c0_9 = arith.constant 0 : index
      %c0_10 = arith.constant 0 : index
      %12 = vector.load %arg4[%c0_9, %c0_10] : memref<2x128xf32, #tpu.memory_space<vmem>>, vector<2x128xf32>
      tpu.vector_store %arg4[%c0_9, %c0_10], %11 {strides = array<i32>} : memref<2x128xf32, #tpu.memory_space<vmem>>, vector<2x128xf32>,
    } else {
    }
    %c0 = arith.constant 0 : index
    %c0_1 = arith.constant 0 : index
    %3 = vector.load %arg4[%c0, %c0_1] : memref<2x128xf32, #tpu.memory_space<vmem>>, vector<2x128xf32>
    %c0_2 = arith.constant 0 : index
    %c0_3 = arith.constant 0 : index
    %c0_4 = arith.constant 0 : index
    %4 = vector.load %arg1[%c0_2, %c0_3, %c0_4] : memref<2x64x128xf32, #tpu.memory_space<vmem>>, vector<2x64x128xf32>
    %cst = arith.constant dense<0.000000e+00> : vector<2x128xf32>
    %5 = vector.multi_reduction <add>, %4, %cst [1] : vector<2x64x128xf32> to vector<2x128xf32>
    %6 = arith.addf %3, %5 : vector<2x128xf32>
    %c0_5 = arith.constant 0 : index
    %c0_6 = arith.constant 0 : index
    %7 = vector.load %arg4[%c0_5, %c0_6] : memref<2x128xf32, #tpu.memory_space<vmem>>, vector<2x128xf32>
    tpu.vector_store %arg4[%c0_5, %c0_6], %6 {strides = array<i32>} : memref<2x128xf32, #tpu.memory_space<vmem>>, vector<2x128xf32>,
    %c1_i32 = arith.constant 1 : i32
    %8 = arith.cmpi eq, %arg0, %c1_i32 : i32
    %9 = arith.extui %8 : i1 to i32
    %c0_i32_7 = arith.constant 0 : i32
    %10 = arith.cmpi ne, %9, %c0_i32_7 : i32
    scf.if %10 {
      %c0_8 = arith.constant 0 : index
      %c0_9 = arith.constant 0 : index
      %11 = vector.load %arg4[%c0_8, %c0_9] : memref<2x128xf32, #tpu.memory_space<vmem>>, vector<2x128xf32>
      %cst_10 = arith.constant 3.906250e-03 : f32
      %12 = vector.broadcast %cst_10 : f32 to vector<2x128xf32>
      %13 = arith.mulf %11, %12 : vector<2x128xf32>
      %c0_11 = arith.constant 0 : index
      %c0_12 = arith.constant 0 : index
      %14 = vector.load %arg2[%c0_11, %c0_12] : memref<128x4xf32, #tpu.memory_space<vmem>>, vector<128x4xf32>
      %cst_13 = arith.constant dense<0.000000e+00> : vector<2x4xf32>
      %15 = tpu.matmul %13, %14, %cst_13 {dimension_numbers = #tpu.dot_dimension_numbers<[1], [0], [0], [1], [0, 0, 1, 1], [], []>} : vector<2x128xf32>, vector<128x4xf32>, vector<2x4xf32> -> vector<2x4xf32>
      %cst_14 = arith.constant 0.000000e+00 : f32
      %16 = vector.broadcast %cst_14 : f32 to vector<2x4xf32>
      %17 = arith.maximumf %15, %16 : vector<2x4xf32>
      %c0_15 = arith.constant 0 : index
      %c0_16 = arith.constant 0 : index
      %18 = vector.load %arg3[%c0_15, %c0_16] : memref<4x128xf32, #tpu.memory_space<vmem>>, vector<4x128xf32>
      %cst_17 = arith.constant dense<0.000000e+00> : vector<2x128xf32>
      %19 = tpu.matmul %17, %18, %cst_17 {dimension_numbers = #tpu.dot_dimension_numbers<[1], [0], [0], [1], [0, 0, 1, 1], [], []>} : vector<2x4xf32>, vector<4x128xf32>, vector<2x128xf32> -> vector<2x128xf32>
      %20 = arith.negf %19 : vector<2x128xf32>
      %21 = math.exp %20 : vector<2x128xf32>
      %cst_18 = arith.constant 1.000000e+00 : f32
      %22 = vector.broadcast %cst_18 : f32 to vector<2x128xf32>
      %23 = arith.addf %22, %21 : vector<2x128xf32>
      %24 = arith.divf %22, %23 : vector<2x128xf32>
      %c0_19 = arith.constant 0 : index
      %c0_20 = arith.constant 0 : index
      %25 = vector.load %arg4[%c0_19, %c0_20] : memref<2x128xf32, #tpu.memory_space<vmem>>, vector<2x128xf32>
      tpu.vector_store %arg4[%c0_19, %c0_20], %24 {strides = array<i32>} : memref<2x128xf32, #tpu.memory_space<vmem>>, vector<2x128xf32>,
    } else {
    }
    return
  }
  func.func @transform_0(%arg0: i32) -> (i32, i32, i32) {
    %c0_i32 = arith.constant 0 : i32
    %c0_i32_0 = arith.constant 0 : i32
    %c0_i32_1 = arith.constant 0 : i32
    return %c0_i32, %arg0, %c0_i32_0 : i32, i32, i32
  }
  func.func @transform_1(%arg0: i32) -> (i32, i32) {
    %c0_i32 = arith.constant 0 : i32
    %c0_i32_0 = arith.constant 0 : i32
    %c0_i32_1 = arith.constant 0 : i32
    return %c0_i32, %c0_i32_0 : i32, i32
  }
  func.func @transform_2(%arg0: i32) -> (i32, i32) {
    %c0_i32 = arith.constant 0 : i32
    %c0_i32_0 = arith.constant 0 : i32
    %c0_i32_1 = arith.constant 0 : i32
    return %c0_i32, %c0_i32_0 : i32, i32
  }
  func.func @transform_3(%arg0: i32) -> (i32, i32) {
    %c0_i32 = arith.constant 0 : i32
    %c0_i32_0 = arith.constant 0 : i32
    %c0_i32_1 = arith.constant 0 : i32
    return %c0_i32, %c0_i32_0 : i32, i32
  }
}

</mosaic_0001>

<bundles_post_ra>
// kernel: tpu_custom_call.1
= control target key start
LH: loop header
LB: loop body
LE: loop exit
PB: predicated region body
PF: predicated region fallthrough
CT: control target
= control target key end

     0   :  { %8 = vsyncpa [#allocation3], 0  ;;  %s894_s0 = inlined_call_operand.hbm [shape: f32[2,128,128], index: 0, kind: input, shape index: {}]   ;;  %s895_s1 = inlined_call_operand.vmem [shape: f32[128,4], index: 1, kind: input, shape index: {}]   ;;  %s896_s2 = inlined_call_operand.vmem [shape: f32[4,128], index: 2, kind: input, shape index: {}]   ;;  %s897_s3 = inlined_call_operand.hbm [shape: f32[2,128], index: 3, kind: output, shape index: {}]  }
   0x1   :  { %10 = vsyncpa [#allocation3 + $0x1], 0 }
   0x2   :  { %11 = vsyncpa [#allocation4], 0  ;;  %s726_s12 = smov 0   ;;  %s728_s13 = smov 0  }
   0x3   :  { %s730_s14 = smov 0   ;;  %s732_s15 = smov 0  }
   0x4 LB: > { %s745_s16 = sadd.s32 4294967295, %s695_s15   ;;  %s748_s17 = sadd.s32 1, %s695_s15   ;;  %s695_s15 = sphi %s732_s15, %s903_s15   ;;  %s691_s14 = sphi %s730_s14, %s902_s14   ;;  %s687_s13 = sphi %s728_s13, %s901_s13   ;;  %s683_s12 = sphi %s726_s12, %s900_s12  }
   0x5   : > { %s21_s18 = ssub.s32 %s695_s15, %s748_s17  ;;  %s24_s19 = sadd.s32 1, %s691_s14 }
   0x6   : > { %p22_p0 = scmp.eq.s32.totalorder %s21_s18, 0  ;;  %p31_p1 = scmp.ne.s32.totalorder %s691_s14, %s687_s13 }
   0x7   : > { %p32_p2 = scmp.eq.s32.totalorder %s695_s15, 0  ;;  %p37_p3 = scmp.ne.s32.totalorder %s687_s13, %s683_s12 }
   0x8   : > { %s758_s20 = scalar_select %p22_p0, %s691_s14, %s24_s19  }
   0x9   : > { %p760_p4 = por %p32_p2, %p31_p1  ;;  %p38_p5 = scmp.eq.s32.totalorder %s745_s16, 0 }
   0xa   : > { %p496_p7 = scmp.ge.s32.totalorder %s695_s15, 2 }
   0xb   : > { %p765_p6 = por %p38_p5, %p37_p3 }
   0xc   : > { %126 = sbr.rel (%p496_p7) target bundleno = 30 (0x1e), region = 24 }
  0x11   : > { %s130_s23 = sand.u32 1, %s691_s14   ;;  %s513_s25 = sshll.u32 %s695_s15, 10 }
  0x12   : > { %s497_s24 = sshll.u32 %s130_s23, 7  ;;  %s140_s29 = scalar_lea.hbm %s894_s0, %s513_s25 }
  0x13   : > { %s573_s26 = scalar_select %p760_p4, [#allocation0], [#allocation8] }
  0x14   : > { %s134_s4 = scalar_lea.vmem [#allocation2], %s497_s24  ;;  %s697_s6 = smov 2048  }
  0x15   : > { %s145_s30 = sld [smem:[%s573_s26]]   ;;  %s153_s5 = sshll.u32 %s134_s4, 4  ;;  %s154_s5 = int_to_ptr.vmem [resolvable:$true] %s153_s5 }
  0x16   : > { %574 = sst [smem:[#allocation7]] (%p760_p4), %s697_s6  ;;  %s698_s7 = smov 1024  }
  0x17   : > { %575 = sst [smem:[#allocation7 + $0x1]] (%p760_p4), %s698_s7  ;;  %s699_s8 = smov 8  }
  0x18   : > { %576 = sst [smem:[#allocation7 + $0x2]] (%p760_p4), %s699_s8  ;;  %s700_s9 = smov 128  }
  0x19   : > { %577 = sst [smem:[#allocation7 + $0x3]] (%p760_p4), %s700_s9  ;;  %s131_s12 = scalar_lea.sflag [#allocation3], %s130_s23 }
  0x1a   : > { %578 = sst [smem:[#allocation7 + $0x4]] (%p760_p4), %s700_s9  ;;  %s701_s18 = smov 131072  }
  0x1b   : > { %s500_s10 = sshll.u32 %s145_s30, 26  ;;  %579 = sst [smem:[#allocation7 + $0x5]] (%p760_p4), %s699_s8 }
  0x1c   : > { %s501_s11 = sadd.s32 134217728, %s500_s10 }
  0x1d   : > { %580 = dma.general (%p760_p4), %s140_s29, 2048, %s154_s5, %s131_s12, %s701_s18, [#allocation7], %s501_s11, 0  }
  0x1e PF: > { %p502_p8 = scmp.ge.s32.totalorder %s695_s15, 1  ;;  %p174_p9 = scmp.lt.s32.totalorder %s695_s15, 3 }
  0x20   : > { %p175_p10 = pnand %p502_p8, %p174_p9 }
  0x21   : > { %s180_s19 = sand.u32 (!%p175_p10), 1, %s687_s13  }
  0x22   : > { %178 = sbr.rel (%p175_p10) target bundleno = 550 (0x226), region = 32  ;;  %s503_s24 = sshll.u32 (!%p175_p10), %s180_s19, 7 }
  0x23   : > { %s181_s25 = scalar_lea.sflag (!%p175_p10), [#allocation3], %s180_s19  ;;  %s794_s26 = scalar_lea.vmem (!%p175_p10), [#allocation2], %s503_s24 }
  0x27   : > { %674 = dma.done.wait (%p765_p6), %s181_s25, 2048  }
  0x28   : > { %676 = vsyncadd (%p765_p6), %s181_s25, 4294965248  ;;  %p504_p11 = scmp.ne.s32.totalorder %s745_s16, 0 }
  0x2a   : > { %206 = sbr.rel (%p504_p11) target bundleno = 49 (0x31), region = 40 }
  0x2f   : > { %v702_v0 = vmov 0.0  }
  0x30   : > { %207 = vst [vmem:[#allocation5] sm:$0x3] %v702_v0 }
  0x31 PF: > { %v209_v1 = vld [vmem:[%s794_s26] sm:$0xff]  ;;  %v210_v2 = vld [vmem:[%s794_s26 + $0x8] sm:$0xff]  ;;  %v211_v3 = vld [vmem:[%s794_s26 + $0x10] sm:$0xff]  ;;  %vm253_vm0 = vcmask 1041409   ;;  %p505_p12 = scmp.ne.s32.totalorder %s745_s16, 1 }
  0x32   : > { %v225_v4 = vadd.f32 %v210_v2, %v209_v1  ;;  %v212_v5 = vld [vmem:[%s794_s26 + $0x18] sm:$0xff]  ;;  %v217_v6 = vld [vmem:[%s794_s26 + $0x40] sm:$0xff]  ;;  %v218_v7 = vld [vmem:[%s794_s26 + $0x48] sm:$0xff] }
  0x33   : > { %v219_v8 = vld [vmem:[%s794_s26 + $0x50] sm:$0xff]  ;;  %v213_v10 = vld [vmem:[%s794_s26 + $0x20] sm:$0xff]  ;;  %v238_v11 = vadd.f32 %v218_v7, %v217_v6  ;;  %v220_v12 = vld [vmem:[%s794_s26 + $0x58] sm:$0xff] }
  0x34   : > { %v226_v9 = vadd.f32 %v225_v4, %v211_v3  ;;  %v214_v14 = vld [vmem:[%s794_s26 + $0x28] sm:$0xff]  ;;  %v221_v16 = vld [vmem:[%s794_s26 + $0x60] sm:$0xff]  ;;  %v215_v18 = vld [vmem:[%s794_s26 + $0x30] sm:$0xff] }
  0x35   : > { %v239_v15 = vadd.f32 %v238_v11, %v219_v8  ;;  %v222_v20 = vld [vmem:[%s794_s26 + $0x68] sm:$0xff]  ;;  %v216_v22 = vld [vmem:[%s794_s26 + $0x38] sm:$0xff]  ;;  %v223_v24 = vld [vmem:[%s794_s26 + $0x70] sm:$0xff] }
  0x36   : > { %v227_v13 = vadd.f32 %v226_v9, %v212_v5  ;;  %v224_v27 = vld [vmem:[%s794_s26 + $0x78] sm:$0xff] }
  0x37   : > { %v240_v19 = vadd.f32 %v239_v15, %v220_v12  ;;  %v208_v42 = vld [vmem:[#allocation5] sm:$0x3] }
  0x38   : > { %v228_v17 = vadd.f32 %v227_v13, %v213_v10 }
  0x39   : > { %v241_v23 = vadd.f32 %v240_v19, %v221_v16 }
  0x3a   : > { %v229_v21 = vadd.f32 %v228_v17, %v214_v14 }
  0x3b   : > { %v242_v26 = vadd.f32 %v241_v23, %v222_v20 }
  0x3c   : > { %v230_v25 = vadd.f32 %v229_v21, %v215_v18 }
  0x3d   : > { %v243_v29 = vadd.f32 %v242_v26, %v223_v24 }
  0x3e   : > { %v231_v28 = vadd.f32 %v230_v25, %v216_v22 }
  0x3f   : > { %v244_v31 = vadd.f32 %v243_v29, %v224_v27 }
  0x40   : > { %v232_v30 = vrot.slane %v231_v28, 4 }
  0x41   : > { %v245_v33 = vrot.slane %v244_v31, 4 }
  0x42   : > { %v233_v32 = vadd.f32 %v232_v30, %v231_v28 }
  0x43   : > { %v246_v35 = vadd.f32 %v245_v33, %v244_v31 }
  0x44   : > { %v234_v34 = vrot.slane %v233_v32, 2 }
  0x45   : > { %v247_v37 = vrot.slane %v246_v35, 2 }
  0x46   : > { %v235_v36 = vadd.f32 %v234_v34, %v233_v32 }
  0x47   : > { %v248_v39 = vadd.f32 %v247_v37, %v246_v35 }
  0x48   : > { %v236_v38 = vrot.slane %v235_v36, 1 }
  0x49   : > { %v249_v41 = vrot.slane %v248_v39, 1 }
  0x4a   : > { %v237_v40 = vadd.f32 %v236_v38, %v235_v36 }
  0x4b   : > { %v250_v43 = vadd.f32 %v249_v41, %v248_v39 }
  0x4c   : > { %261 = sbr.rel (%p505_p12) target bundleno = 535 (0x217), region = 44 }
  0x4d   : > { %v254_v44 = vsel %vm253_vm0, %v250_v43, %v237_v40 }
  0x4e   : > { %v256_v45 = vadd.f32 %v254_v44, %v208_v42 }
  0x50   : > { %257 = vst [vmem:[#allocation5] sm:$0x3] %v256_v45 }
  0x51   : > { %v279_v46 = vld [vmem:[%s895_s1 + $0x78] sm:$0xff]  ;;  %v703_v47 = vmov 0.0   ;;  %v278_v48 = vld [vmem:[%s895_s1 + $0x70] sm:$0xff]  ;;  %vm704_vm1 = vmmov 0   ;;  %v277_v49 = vld [vmem:[%s895_s1 + $0x68] sm:$0xff]  ;;  %vm356_vm2 = vcmask 1043456  }
  0x52   : > { %533 = vmatprep.subr.mxu0 %v703_v47  ;;  %565 = vmatprep.mubr.msk.f32.mxu0 %vm704_vm1, %v703_v47  ;;  %v276_v50 = vld [vmem:[%s895_s1 + $0x60] sm:$0xff]  ;;  %v275_v51 = vld [vmem:[%s895_s1 + $0x58] sm:$0xff]  ;;  %v274_v52 = vld [vmem:[%s895_s1 + $0x50] sm:$0xff]  ;;  %vm352_vm3 = vcmask 31744  }
  0x53   : > { %534 = vmatpush3.msra.mxu0 %v279_v46  ;;  %568 = vmatprep.subr.mxu1 %v703_v47  ;;  %v273_v53 = vld [vmem:[%s895_s1 + $0x48] sm:$0xff]  ;;  %v272_v54 = vld [vmem:[%s895_s1 + $0x40] sm:$0xff]  ;;  %v271_v55 = vld [vmem:[%s895_s1 + $0x38] sm:$0xff] }
  0x54   : > { %535 = vmatprep.subr.mxu0 %v703_v47  ;;  %570 = vmatprep.mubr.msk.f32.mxu1 %vm704_vm1, %v703_v47  ;;  %v270_v56 = vld [vmem:[%s895_s1 + $0x30] sm:$0xff]  ;;  %v269_v57 = vld [vmem:[%s895_s1 + $0x28] sm:$0xff]  ;;  %v268_v58 = vld [vmem:[%s895_s1 + $0x20] sm:$0xff] }
  0x55   : > { %536 = vmatpush3.msra.mxu0 %v278_v48  ;;  %v267_v59 = vld [vmem:[%s895_s1 + $0x18] sm:$0xff]  ;;  %v266_v60 = vld [vmem:[%s895_s1 + $0x10] sm:$0xff]  ;;  %v265_v62 = vld [vmem:[%s895_s1 + $0x8] sm:$0xff] }
  0x56   : > { %537 = vmatprep.subr.mxu0 %v703_v47  ;;  %v264_v63 = vld [vmem:[%s895_s1] sm:$0xff] }
  0x57   : > { %538 = vmatpush3.msra.mxu0 %v277_v49  ;;  %v262_v61 = vld [vmem:[#allocation5] sm:$0x3] }
  0x58   : > { %539 = vmatprep.subr.mxu0 %v703_v47  ;;  %v263_v0 = vmul.f32 0.00390625, %v262_v61  ;;  %v351_v1 = vld [vmem:[%s896_s2] sm:$0xf] }
  0x59   : > { %540 = vmatpush3.msra.mxu0 %v276_v50  ;;  %569 = vmatpush3.msk.msra.mxu1 %vm356_vm2, %v351_v1 }
  0x5a   : > { %541 = vmatprep.subr.mxu0 %v703_v47 }
  0x5b   : > { %542 = vmatpush3.msra.mxu0 %v275_v51 }
  0x5c   : > { %543 = vmatprep.subr.mxu0 %v703_v47 }
  0x5d   : > { %544 = vmatpush3.msra.mxu0 %v274_v52 }
  0x5e   : > { %545 = vmatprep.subr.mxu0 %v703_v47 }
  0x5f   : > { %546 = vmatpush3.msra.mxu0 %v273_v53 }
  0x60   : > { %547 = vmatprep.subr.mxu0 %v703_v47 }
  0x61   : > { %548 = vmatpush3.msra.mxu0 %v272_v54 }
  0x62   : > { %549 = vmatprep.subr.mxu0 %v703_v47 }
  0x63   : > { %550 = vmatpush3.msra.mxu0 %v271_v55 }
  0x64   : > { %551 = vmatprep.subr.mxu0 %v703_v47 }
  0x65   : > { %552 = vmatpush3.msra.mxu0 %v270_v56 }
  0x66   : > { %553 = vmatprep.subr.mxu0 %v703_v47 }
  0x67   : > { %554 = vmatpush3.msra.mxu0 %v269_v57 }
  0x68   : > { %555 = vmatprep.subr.mxu0 %v703_v47 }
  0x69   : > { %556 = vmatpush3.msra.mxu0 %v268_v58 }
  0x6a   : > { %557 = vmatprep.subr.mxu0 %v703_v47 }
  0x6b   : > { %558 = vmatpush3.msra.mxu0 %v267_v59 }
  0x6c   : > { %559 = vmatprep.subr.mxu0 %v703_v47 }
  0x6d   : > { %560 = vmatpush3.msra.mxu0 %v266_v60 }
  0x6e   : > { %561 = vmatprep.subr.mxu0 %v703_v47 }
  0x6f   : > { %562 = vmatpush3.msra.mxu0 %v265_v62 }
  0x70   : > { %563 = vmatprep.subr.mxu0 %v703_v47 }
  0x71   : > { %564 = vmatpush3.msra.mxu0 %v264_v63 }
  0x72   : > { %566 = vmatmul.mubr.f32.vlgmr.msra.gmra.mxu0 %v263_v0 }
 0x132   : > { %v346_v2 = vpop.f32.mrf.mxu0 }
 0x133   : > { %v350_v3 = vmax.f32 %v346_v2, 0.0 }
 0x134   : > { %v567_v4 = vpop.f32.mrf.mxu0 }
 0x135   : > { %571 = vmatmul.mubr.msk.f32.vlgmr.msra.gmra.mxu1 %vm352_vm3, %v350_v3 }
 0x1f5   : > { %v426_v5 = vpop.f32.mrf.mxu1 }
 0x1f6   : > { %v508_v6 = vmul.f32 -1.442695, %v426_v5 }
 0x1f7   : > { %v572_v7 = vpop.f32.mrf.mxu1 }
 0x1f8   : > { %629 = vpow2.f32 %v508_v6 }
 0x205   : > { %v630_v8 = vpop.eup %629 }
 0x206   : > { %v433_v9 = vadd.f32 1.0, %v630_v8 }
 0x208   : > { %631 = vrcp.f32 %v433_v9 }
 0x215   : > { %v632_v10 = vpop.eup %631 }
 0x216   : > { %436 = vst [vmem:[#allocation5] sm:$0x3] %v632_v10 }
 0x217 PF: > { %p586_p13 = scmp.eq.s32.totalorder %s745_s16, 1  ;;  %s705_s8 = smov [#allocation5]  }
 0x218   : > { %s444_s9 = sshll.u32 %s705_s8, 4  ;;  %s445_s9 = int_to_ptr.vmem [resolvable:$true] %s444_s9 }
 0x219   : > { %s633_s10 = scalar_lea.vmem %s445_s9, 32  ;;  %p640_p3 = scmp.lt.s32.totalorder %s445_s9, %s445_s9 }
 0x21a   : > { %p634_p0 = scmp.ne.s32.totalorder %s445_s9, %s633_s10  ;;  %p641_p4 = scmp.lt.s32.totalorder %s633_s10, %s633_s10 }
 0x21c   : > { %p635_p1 = pnand %p634_p0, %p586_p13  ;;  %p642_p5 = por %p641_p4, %p640_p3 }
 0x21e   : > { %p636_p2 = pneg %p635_p1 }
 0x220   : > { %p643_p6 = pnand %p642_p5, %p636_p2 }
 0x222   : > { %646 = shalt.err (!%p643_p6)
}
 0x223   : > { %583 = dma.vmem_to_hbm [thread:$0]  (%p586_p13), %s445_s9, 32, %s897_s3, [#allocation4]  }
 0x224   : > { %678 = dma.done.wait (%p586_p13), [#allocation4], 32  }
 0x225   : > { %680 = vsyncadd (%p586_p13), [#allocation4], 4294967264 }
 0x226 PF: > { %p14_p7 = scmp.ge.s32.totalorder %s748_s17, 4   ;;  %s900_s12 = smov %s687_s13 }
 0x227   : > { %s901_s13 = smov %s691_s14  ;;  %s902_s14 = smov %s758_s20 }
 0x228   : > { %s903_s15 = smov %s748_s17  ;;  %16 = sbr.rel (!%p14_p7) target bundleno = 4 (0x4), region = 82 }
 0x22d   :  { %457 = vsyncpa [#allocation3], 1 }
 0x22e   :  { %459 = vsyncpa [#allocation3 + $0x1], 1 }
 0x22f   :  { %460 = vsyncpa [#allocation4], 1 }
 0x230   :  { %462 = vsyncpa [#allocation4 + $0x1], 1 }

</bundles_post_ra>
